<compile_context>
chip_gen: v5e
topology: v5e:2x2
jax: 0.10.0
libtpu: 0.0.40
codegen_flags: <defaults>
</compile_context>

<pallas_src>
import functools

import jax
import jax.numpy as jnp
from jax.experimental import pallas as pl
from jax.experimental.pallas import tpu as pltpu

_LANE = 128     # lane width: last dim multiples
_SUBLANE = 8    # sublane width: second-to-last dim multiples


def _round_up(n: int, m: int) -> int:
    return ((n + m - 1) // m) * m


# ---------------------------------------------------------------------------
# Pallas kernel: fused Linear -> ReLU -> Linear (one batch tile per grid step)
# ---------------------------------------------------------------------------
def _mlp_fwd_kernel(x_ref, w1_ref, b1_ref, w2_ref, b2_ref, o_ref):
    # First linear: bf16 MXU operands, f32 accumulation.
    x = x_ref[...]
    h = jnp.dot(x.astype(jnp.bfloat16), w1_ref[...],
                preferred_element_type=jnp.float32)
    # f32 epilogue on the VPU (bias broadcast (1, H) over the batch tile + ReLU).
    h = jnp.maximum(h + b1_ref[...], 0.0)
    # Second linear: cast only immediately before the dot (keep h resident f32).
    y = jnp.dot(h.astype(jnp.bfloat16), w2_ref[...],
                preferred_element_type=jnp.float32)
    o_ref[...] = (y + b2_ref[...]).astype(o_ref.dtype)


@functools.partial(jax.jit, static_argnames=("block_b",))
def mlp_forward_pallas(x, w1, b1, w2, b2, *, block_b: int = 128):
    """Inner model forward: relu(x @ w1 + b1) @ w2 + b2, Pallas-backed.

    Pads all feature dims to 128 lanes (lane-dense output stores, full MXU
    passes) and the batch dim to a multiple of the batch tile; padding is
    zero-filled so results are unchanged and sliced off before returning.
    """
    B, d_in = x.shape
    h_dim = w1.shape[1]
    d_out = w2.shape[1]

    # --- pad feature dims to 128-lane multiples, batch to the tile size -----
    d_in_p = _round_up(d_in, _LANE)
    h_p = _round_up(h_dim, _LANE)
    d_out_p = _round_up(d_out, _LANE)
    tb = min(block_b, _round_up(B, _SUBLANE))
    b_p = _round_up(B, tb)

    xp = jnp.zeros((b_p, d_in_p), jnp.float32).at[:B, :d_in].set(x)
    # Weights pre-cast to bf16 once (MXU-native); zero padding keeps math exact.
    w1p = jnp.zeros((d_in_p, h_p), jnp.bfloat16).at[:d_in, :h_dim].set(
        w1.astype(jnp.bfloat16))
    w2p = jnp.zeros((h_p, d_out_p), jnp.bfloat16).at[:h_dim, :d_out].set(
        w2.astype(jnp.bfloat16))
    b1p = jnp.zeros((1, h_p), jnp.float32).at[:, :h_dim].set(b1)
    b2p = jnp.zeros((1, d_out_p), jnp.float32).at[:, :d_out].set(b2)

    grid = (b_p // tb,)

    out_p = pl.pallas_call(
        _mlp_fwd_kernel,
        out_shape=jax.ShapeDtypeStruct((b_p, d_out_p), jnp.float32),
        grid=grid,
        in_specs=[
            # activations: one batch tile per grid step (pipelined DMA)
            pl.BlockSpec((tb, d_in_p), lambda i: (i, 0)),
            # weights & biases: VMEM-resident across the whole grid
            pl.BlockSpec((d_in_p, h_p), lambda i: (0, 0)),
            pl.BlockSpec((1, h_p), lambda i: (0, 0)),
            pl.BlockSpec((h_p, d_out_p), lambda i: (0, 0)),
            pl.BlockSpec((1, d_out_p), lambda i: (0, 0)),
        ],
        out_specs=pl.BlockSpec((tb, d_out_p), lambda i: (i, 0)),
        compiler_params=pltpu.CompilerParams(
            dimension_semantics=("parallel",),   # shards across TCs on v7x
        ),
    )(xp, w1p, b1p, w2p, b2p)

    return out_p[:B, :d_out]


# ---------------------------------------------------------------------------
# The adapter: pure passthrough, exactly like the PyTorch module.
# ---------------------------------------------------------------------------
class OpacusModelAdapter:
    """JAX equivalent of _OpacusModelAdapter: forwards all args to `_module`.

    Opacus only renames parameters with a "_module." prefix; the forward pass
    is an identity wrapper, so the adapter itself needs no Pallas compute.
    """

    def __init__(self, module_fn):
        self._module = module_fn

    def __call__(self, *args, **kwargs):
        return self._module(*args, **kwargs)


if __name__ == "__main__":
    # Small, deterministic problem sizes (logical model dims; kernel pads to
    # lane-dense shapes internally).
    B, D_IN, H, D_OUT = 8, 32, 64, 16

    key = jax.random.PRNGKey(0)
    kx, k1, k2 = jax.random.split(key, 3)

    x = jax.random.normal(kx, (B, D_IN), dtype=jnp.float32)
    w1 = jax.random.normal(k1, (D_IN, H), dtype=jnp.float32) * 0.05
    b1 = jnp.zeros((1, H), dtype=jnp.float32)
    w2 = jax.random.normal(k2, (H, D_OUT), dtype=jnp.float32) * 0.05
    b2 = jnp.zeros((1, D_OUT), dtype=jnp.float32)

    # Wrapped model (Pallas-backed forward), then the Opacus adapter on top.
    inner_model = lambda inp: mlp_forward_pallas(inp, w1, b1, w2, b2)
    adapted = OpacusModelAdapter(inner_model)

    out = adapted(x)
    jax.block_until_ready(out)

    # Sanity check: adapter is a pure passthrough of the inner model; kernel
    # matches a plain-JAX f32 reference (tolerance loosened for bf16 MXU inputs).
    ref = jnp.maximum(x @ w1 + b1, 0.0) @ w2 + b2
    assert out.shape == (B, D_OUT)
    assert jnp.allclose(out, ref, atol=2e-2, rtol=2e-2), \
        float(jnp.max(jnp.abs(out - ref)))

    print("KERNEL_OK")
</pallas_src>

<mosaic_0001>
module attributes {stable_mosaic.version = 11 : i64} {
  func.func @_mlp_fwd_kernel(%arg0: i32, %arg1: memref<8x128xf32, #tpu.memory_space<vmem>>, %arg2: memref<128x128xbf16, #tpu.memory_space<vmem>>, %arg3: memref<1x128xf32, #tpu.memory_space<vmem>>, %arg4: memref<128x128xbf16, #tpu.memory_space<vmem>>, %arg5: memref<1x128xf32, #tpu.memory_space<vmem>>, %arg6: memref<8x128xf32, #tpu.memory_space<vmem>>) attributes {dimension_semantics = [#tpu.dimension_semantics<parallel>], iteration_bounds = array<i64: 1>, scalar_prefetch = 0 : i64, scratch_operands = 0 : i64, tpu.core_type = #tpu.core_type<tc>, window_params = [{transform_indices = @transform_0, window_bounds = array<i64: 8, 128>}, {pipeline_mode = #tpu.pipeline_mode<synchronous>, transform_indices = @transform_1, window_bounds = array<i64: 128, 128>}, {pipeline_mode = #tpu.pipeline_mode<synchronous>, transform_indices = @transform_2, window_bounds = array<i64: 1, 128>}, {pipeline_mode = #tpu.pipeline_mode<synchronous>, transform_indices = @transform_3, window_bounds = array<i64: 128, 128>}, {pipeline_mode = #tpu.pipeline_mode<synchronous>, transform_indices = @transform_4, window_bounds = array<i64: 1, 128>}, {transform_indices = @transform_5, window_bounds = array<i64: 8, 128>}]} {
    %c0 = arith.constant 0 : index
    %c0_0 = arith.constant 0 : index
    %0 = vector.load %arg1[%c0, %c0_0] : memref<8x128xf32, #tpu.memory_space<vmem>>, vector<8x128xf32>
    %1 = arith.truncf %0 : vector<8x128xf32> to vector<8x128xbf16>
    %c0_1 = arith.constant 0 : index
    %c0_2 = arith.constant 0 : index
    %2 = vector.load %arg2[%c0_1, %c0_2] : memref<128x128xbf16, #tpu.memory_space<vmem>>, vector<128x128xbf16>
    %cst = arith.constant dense<0.000000e+00> : vector<8x128xf32>
    %3 = tpu.matmul %1, %2, %cst {dimension_numbers = #tpu.dot_dimension_numbers<[1], [0], [0], [1], [0, 0, 1, 1], [], []>} : vector<8x128xbf16>, vector<128x128xbf16>, vector<8x128xf32> -> vector<8x128xf32>
    %c0_3 = arith.constant 0 : index
    %c0_4 = arith.constant 0 : index
    %4 = vector.load %arg3[%c0_3, %c0_4] : memref<1x128xf32, #tpu.memory_space<vmem>>, vector<1x128xf32>
    %5 = vector.broadcast %4 : vector<1x128xf32> to vector<8x128xf32>
    %6 = arith.addf %3, %5 : vector<8x128xf32>
    %cst_5 = arith.constant 0.000000e+00 : f32
    %7 = vector.broadcast %cst_5 : f32 to vector<8x128xf32>
    %8 = arith.maximumf %6, %7 : vector<8x128xf32>
    %9 = arith.truncf %8 : vector<8x128xf32> to vector<8x128xbf16>
    %c0_6 = arith.constant 0 : index
    %c0_7 = arith.constant 0 : index
    %10 = vector.load %arg4[%c0_6, %c0_7] : memref<128x128xbf16, #tpu.memory_space<vmem>>, vector<128x128xbf16>
    %cst_8 = arith.constant dense<0.000000e+00> : vector<8x128xf32>
    %11 = tpu.matmul %9, %10, %cst_8 {dimension_numbers = #tpu.dot_dimension_numbers<[1], [0], [0], [1], [0, 0, 1, 1], [], []>} : vector<8x128xbf16>, vector<128x128xbf16>, vector<8x128xf32> -> vector<8x128xf32>
    %c0_9 = arith.constant 0 : index
    %c0_10 = arith.constant 0 : index
    %12 = vector.load %arg5[%c0_9, %c0_10] : memref<1x128xf32, #tpu.memory_space<vmem>>, vector<1x128xf32>
    %13 = vector.broadcast %12 : vector<1x128xf32> to vector<8x128xf32>
    %14 = arith.addf %11, %13 : vector<8x128xf32>
    %c0_11 = arith.constant 0 : index
    %c0_12 = arith.constant 0 : index
    %15 = vector.load %arg6[%c0_11, %c0_12] : memref<8x128xf32, #tpu.memory_space<vmem>>, vector<8x128xf32>
    tpu.vector_store %arg6[%c0_11, %c0_12], %14 {strides = array<i32>} : memref<8x128xf32, #tpu.memory_space<vmem>>, vector<8x128xf32>,
    return
  }
  func.func @transform_0(%arg0: i32) -> (i32, i32) {
    %c0_i32 = arith.constant 0 : i32
    %c0_i32_0 = arith.constant 0 : i32
    return %arg0, %c0_i32 : i32, i32
  }
  func.func @transform_1(%arg0: i32) -> (i32, i32) {
    %c0_i32 = arith.constant 0 : i32
    %c0_i32_0 = arith.constant 0 : i32
    %c0_i32_1 = arith.constant 0 : i32
    return %c0_i32, %c0_i32_0 : i32, i32
  }
  func.func @transform_2(%arg0: i32) -> (i32, i32) {
    %c0_i32 = arith.constant 0 : i32
    %c0_i32_0 = arith.constant 0 : i32
    %c0_i32_1 = arith.constant 0 : i32
    return %c0_i32, %c0_i32_0 : i32, i32
  }
  func.func @transform_3(%arg0: i32) -> (i32, i32) {
    %c0_i32 = arith.constant 0 : i32
    %c0_i32_0 = arith.constant 0 : i32
    %c0_i32_1 = arith.constant 0 : i32
    return %c0_i32, %c0_i32_0 : i32, i32
  }
  func.func @transform_4(%arg0: i32) -> (i32, i32) {
    %c0_i32 = arith.constant 0 : i32
    %c0_i32_0 = arith.constant 0 : i32
    %c0_i32_1 = arith.constant 0 : i32
    return %c0_i32, %c0_i32_0 : i32, i32
  }
  func.func @transform_5(%arg0: i32) -> (i32, i32) {
    %c0_i32 = arith.constant 0 : i32
    %c0_i32_0 = arith.constant 0 : i32
    return %arg0, %c0_i32 : i32, i32
  }
}

</mosaic_0001>

<bundles_post_ra>
// kernel: mlp_forward_pallas.1
= control target key start
LH: loop header
LB: loop body
LE: loop exit
PB: predicated region body
PF: predicated region fallthrough
CT: control target
= control target key end

     0   :  { %s404_s0 = inlined_call_operand.vmem [shape: f32[8,128], index: 0, kind: input, shape index: {}]   ;;  %s405_s1 = inlined_call_operand.vmem [shape: bf16[128,128], index: 1, kind: input, shape index: {}]   ;;  %s406_s2 = inlined_call_operand.vmem [shape: f32[1,128], index: 2, kind: input, shape index: {}]   ;;  %s407_s3 = inlined_call_operand.vmem [shape: bf16[128,128], index: 3, kind: input, shape index: {}]   ;;  %s408_s4 = inlined_call_operand.vmem [shape: f32[1,128], index: 4, kind: input, shape index: {}]   ;;  %s409_s5 = inlined_call_operand.hbm [shape: f32[8,128], index: 5, kind: output, shape index: {}]  }
   0x1   :  { %v275_v0 = vld [vmem:[%s405_s1 + $0x38] sm:$0xff]  ;;  %v274_v1 = vld [vmem:[%s405_s1 + $0x30] sm:$0xff]  ;;  %v273_v4 = vld [vmem:[%s405_s1 + $0x28] sm:$0xff] }
   0x2   :  { %91 = vmatpush.bf16.msra.mxu0 %v275_v0  ;;  %v283_v2 = vld [vmem:[%s407_s3 + $0x38] sm:$0xff]  ;;  %v282_v3 = vld [vmem:[%s407_s3 + $0x30] sm:$0xff] }
   0x3   :  { %174 = vmatpush.bf16.msra.mxu1 %v283_v2 }
   0x6   :  { %92 = vmatpush.bf16.msra.mxu0 %v274_v1 }
   0x7   :  { %10 = vsyncpa [#allocation3], 0  ;;  %175 = vmatpush.bf16.msra.mxu1 %v282_v3  ;;  %v281_v5 = vld [vmem:[%s407_s3 + $0x28] sm:$0xff]  ;;  %v272_v6 = vld [vmem:[%s405_s1 + $0x20] sm:$0xff]  ;;  %s313_s29 = smov [#allocation2]  }
   0x8   :  { %v280_v7 = vld [vmem:[%s407_s3 + $0x20] sm:$0xff]  ;;  %v271_v8 = vld [vmem:[%s405_s1 + $0x18] sm:$0xff]  ;;  %v270_v10 = vld [vmem:[%s405_s1 + $0x10] sm:$0xff]  ;;  %s193_s30 = sshll.u32 %s313_s29, 4  ;;  %s194_s30 = int_to_ptr.vmem [resolvable:$true] %s193_s30 }
   0x9   :  { %v279_v9 = vld [vmem:[%s407_s3 + $0x18] sm:$0xff]  ;;  %v278_v11 = vld [vmem:[%s407_s3 + $0x10] sm:$0xff]  ;;  %v269_v12 = vld [vmem:[%s405_s1 + $0x8] sm:$0xff] }
   0xa   :  { %93 = vmatpush.bf16.msra.mxu0 %v273_v4  ;;  %v268_v13 = vld [vmem:[%s405_s1] sm:$0xff]  ;;  %v277_v16 = vld [vmem:[%s407_s3 + $0x8] sm:$0xff] }
   0xb   :  { %176 = vmatpush.bf16.msra.mxu1 %v281_v5  ;;  %v21_v14 = vld [vmem:[%s404_s0] sm:$0xff] }
   0xc   :  { %v22_v15 = vpack.c.bf16 %v21_v14, %v21_v14  ;;  %v276_v17 = vld [vmem:[%s407_s3] sm:$0xff]  ;;  %s195_s3 = sshll.u32 %s409_s5, 4  ;;  %s196_s3 = int_to_ptr.hbm [resolvable:$true] %s195_s3 }
   0xd   :  { %v285_v18 = vld [vmem:[%s406_s2] ss:$0 sm:$0xff] }
   0xe   :  { %94 = vmatpush.bf16.msra.mxu0 %v272_v6  ;;  %v286_v24 = vld [vmem:[%s408_s4] ss:$0 sm:$0xff] }
   0xf   :  { %177 = vmatpush.bf16.msra.mxu1 %v280_v7 }
  0x12   :  { %95 = vmatpush.bf16.msra.mxu0 %v271_v8 }
  0x13   :  { %178 = vmatpush.bf16.msra.mxu1 %v279_v9 }
  0x16   :  { %96 = vmatpush.bf16.msra.mxu0 %v270_v10 }
  0x17   :  { %179 = vmatpush.bf16.msra.mxu1 %v278_v11 }
  0x1a   :  { %97 = vmatpush.bf16.msra.mxu0 %v269_v12 }
  0x1b   :  { %180 = vmatpush.bf16.msra.mxu1 %v277_v16 }
  0x1e   :  { %98 = vmatpush.bf16.msra.mxu0 %v268_v13 }
  0x1f   :  { %181 = vmatpush.bf16.msra.mxu1 %v276_v17 }
  0x21   :  { %99 = vmatmul.bf16.vlgmr.msra.gmra.mxu0 %v22_v15 }
  0x9e   :  { %v100_v19 = vpop.f32.mrf.mxu0 }
  0x9f   :  { %v101_v20 = vadd.f32 %v285_v18, %v100_v19 }
  0xa1   :  { %v104_v21 = vmax.f32 %v101_v20, 0.0 }
  0xa3   :  { %v105_v22 = vpack.c.bf16 %v104_v21, %v104_v21 }
  0xa5   :  { %182 = vmatmul.bf16.vlgmr.msra.gmra.mxu1 %v105_v22 }
  0xa6   :  { %v102_v23 = vpop.f32.mrf.mxu0 }
 0x122   :  { %v183_v25 = vpop.f32.mrf.mxu1 }
 0x123   :  { %v184_v26 = vadd.f32 %v286_v24, %v183_v25 }
 0x125   :  { %187 = vst [vmem:[#allocation2] sm:$0xff] %v184_v26 }
 0x126   :  { %198 = dma.vmem_to_hbm [thread:$0]  %s194_s30, 128, %s196_s3, [#allocation3]  }
 0x12a   :  { %v185_v27 = vpop.f32.mrf.mxu1 }
 0x12b   :  { %311 = dma.done.wait [#allocation3], 128  }
 0x12c   :  { %312 = vsyncadd [#allocation3], 4294967168 }
 0x12d   :  { %203 = vsyncpa [#allocation3], 1 }

</bundles_post_ra>
